<compile_context>
chip_gen: v5e
topology: v5e:2x2
jax: 0.10.0
libtpu: 0.0.40
codegen_flags: <defaults>
</compile_context>

<pallas_src>
import math
import numpy as np
import jax
import jax.numpy as jnp
from jax.experimental import pallas as pl
from jax.experimental.pallas import tpu as pltpu

SELU_ALPHA = 1.6732632423543772
SELU_SCALE = 1.0507009873554805
OUT_W = 128            # lane-dense output slab width: [mean(A) | value(1) | logp(1) | 0...]


def _selu(x):
    return SELU_SCALE * jnp.where(x > 0, x, SELU_ALPHA * (jnp.exp(x) - 1.0))


def _round_up(x, m):
    return ((x + m - 1) // m) * m


# ------------------------------- kernel -------------------------------------

def _make_kernel(n_layers):
    def kernel(state_ref, actions_ref, inv_sigma_ref, const_ref, *rest):
        # rest = (w0, b0, ..., w_{L-1}, b_{L-1}, out_ref); weights are (in, out).
        wb, out_ref = rest[:-1], rest[-1]
        act_dim = actions_ref.shape[1]

        # Fused actor||critic MLP.  Final layer is zero-padded to OUT_W lanes so
        # h ends up (TB, OUT_W) = [actions_mean (A) | value (1) | zeros...].
        h = state_ref[...]
        for li in range(n_layers):
            w_ref = wb[2 * li]
            b_ref = wb[2 * li + 1]
            h = jnp.dot(h, w_ref[...], preferred_element_type=jnp.float32) + b_ref[...]
            if li < n_layers - 1:
                h = _selu(h)

        # Diagonal-Gaussian log-prob; inv_sigma = exp(-2*log_std) and the
        # additive constant are precomputed in the wrapper.
        mean = h[:, :act_dim]                                    # (TB, A)
        z = (actions_ref[...] - mean) * inv_sigma_ref[...]       # (TB, A)
        logp = -0.5 * jnp.sum(z * z, axis=-1, keepdims=True) + const_ref[...]

        # Single lane-dense store: lane (A+1) carries logp, everything else is h.
        lane = jax.lax.broadcasted_iota(jnp.int32, h.shape, 1)
        out_ref[...] = jnp.where(lane == act_dim + 1, logp, h)
    return kernel


# --------------------------- parameter fusion --------------------------------

def _fuse_params(actor_params, critic_params, act_dim):
    """Fuse actor/critic per layer.

    layer 0: [aw | cw] (shared input x); layers 1..L-2: blockdiag(aw, cw);
    last layer: blockdiag placed into a (H, OUT_W) zero-padded slab so the
    kernel's final matmul directly emits the lane-dense [mean | value | 0...]
    layout.  Params are (W(in,out), b(1,out)).
    """
    assert len(actor_params) == len(critic_params), (
        "fused kernel assumes actor and critic MLPs have the same depth")
    n = len(actor_params)
    fused = []
    for li in range(n):
        aw, ab = actor_params[li]
        cw, cb = critic_params[li]
        if li == 0:
            w = jnp.concatenate([aw, cw], axis=1)
            b = jnp.concatenate([ab, cb], axis=1)
        elif li < n - 1:
            w = jnp.block([
                [aw, jnp.zeros((aw.shape[0], cw.shape[1]), jnp.float32)],
                [jnp.zeros((cw.shape[0], aw.shape[1]), jnp.float32), cw]])
            b = jnp.concatenate([ab, cb], axis=1)
        else:
            assert act_dim + 2 <= OUT_W
            h_a, h_c = aw.shape[0], cw.shape[0]
            w = jnp.zeros((h_a + h_c, OUT_W), jnp.float32)
            w = w.at[:h_a, :act_dim].set(aw)
            w = w.at[h_a:, act_dim:act_dim + 1].set(cw)
            b = jnp.zeros((1, OUT_W), jnp.float32)
            b = b.at[:, :act_dim].set(ab)
            b = b.at[:, act_dim:act_dim + 1].set(cb)
        fused.append((w, b))
    return fused


# ------------------------------- wrapper --------------------------------------

def actor_critic_evaluate(state, actions, log_std, actor_params, critic_params,
                          *, block_b=512):
    """Fused evaluate(): returns (log_prob (B,), entropy (B,), value (B,1), mean (B,A))."""
    B, obs_dim = state.shape
    A = actions.shape[1]
    n_layers = len(actor_params)

    fused = _fuse_params(actor_params, critic_params, A)

    # Per-call Gaussian constants hoisted out of the kernel.
    inv_sigma = jnp.exp(-2.0 * log_std)                          # (1, A)
    sum_2ls = jnp.sum(2.0 * log_std)
    logp_const = jnp.reshape(-sum_2ls - 0.5 * A * math.log(2.0 * math.pi), (1, 1))
    ent_scalar = 0.5 * A * (1.0 + math.log(2.0 * math.pi)) + sum_2ls

    # Batch tiling: TB rows per grid step (multiple of 8); pad B up if needed.
    TB = min(block_b, _round_up(B, 8))
    B_pad = _round_up(B, TB)
    if B_pad != B:
        state = jnp.pad(state, ((0, B_pad - B), (0, 0)))
        actions = jnp.pad(actions, ((0, B_pad - B), (0, 0)))
    grid = (B_pad // TB,)

    streamed = lambda d: pl.BlockSpec((TB, d), lambda i: (i, 0))
    resident = lambda shp: pl.BlockSpec(shp, lambda i: (0, 0))   # same block every step

    in_specs = [streamed(obs_dim), streamed(A), resident((1, A)), resident((1, 1))]
    flat_params = []
    for w, b in fused:
        in_specs += [resident(w.shape), resident(b.shape)]
        flat_params += [w, b]

    flops = 2 * B_pad * sum(int(w.size) for w, _ in fused)
    transcend = B_pad * sum(int(b.size) for _, b in fused[:-1])      # SELU exps
    bytes_acc = 4 * (int(state.size) + int(actions.size) + B_pad * OUT_W
                     + sum(int(w.size) + int(b.size) for w, b in fused))

    slab = pl.pallas_call(
        _make_kernel(n_layers),
        out_shape=jax.ShapeDtypeStruct((B_pad, OUT_W), jnp.float32),
        grid=grid,
        in_specs=in_specs,
        out_specs=pl.BlockSpec((TB, OUT_W), lambda i: (i, 0)),
        compiler_params=pltpu.CompilerParams(dimension_semantics=("parallel",)),
        cost_estimate=pl.CostEstimate(flops=flops, transcendentals=transcend,
                                      bytes_accessed=bytes_acc),
    )(state, actions, inv_sigma, logp_const, *flat_params)

    mean = slab[:B, :A]
    value = slab[:B, A:A + 1]
    logp = slab[:B, A + 1]
    entropy = jnp.broadcast_to(ent_scalar, (B,))                 # batch constant
    return logp, entropy, value, mean


# ---------------- deterministic parameter construction -----------------------

def _orthogonal(key, shape, gain):
    """PyTorch-style orthogonal init for a (in, out) weight matrix."""
    rows, cols = shape
    a = jax.random.normal(key, (max(rows, cols), min(rows, cols)), dtype=jnp.float32)
    q, r = jnp.linalg.qr(a)
    q = q * jnp.sign(jnp.diagonal(r))
    if rows < cols:
        q = q.T
    return (gain * q[:rows, :cols]).astype(jnp.float32)


def build_mlp_params(key, sizes, gains):
    """sizes = [in, h1, h2, h3, out]; returns list of (W(in,out), b(1,out))."""
    params = []
    for i, (din, dout) in enumerate(zip(sizes[:-1], sizes[1:])):
        key, wk = jax.random.split(key)
        w = _orthogonal(wk, (din, dout), gains[i])
        b = jnp.zeros((1, dout), dtype=jnp.float32)
        params.append((w, b))
    return params


# ---------------- pure-JAX reference for sanity check -------------------------

def _ref_mlp(x, params):
    h = x
    for i, (w, b) in enumerate(params):
        h = h @ w + b
        if i < len(params) - 1:
            h = _selu(h)
    return h


def _ref_evaluate(state, actions, log_std, actor_params, critic_params):
    mean = _ref_mlp(state, actor_params)
    value = _ref_mlp(state, critic_params)
    A = mean.shape[-1]
    sigma = jnp.exp(2.0 * log_std)
    z = (actions - mean) / sigma
    logp = (-0.5 * jnp.sum(z * z, axis=-1)
            - jnp.sum(2.0 * log_std)
            - 0.5 * A * math.log(2.0 * math.pi))
    ent = jnp.full((state.shape[0],),
                   0.5 * A * (1.0 + math.log(2.0 * math.pi)) + jnp.sum(2.0 * log_std))
    return logp, ent, value, mean


if __name__ == "__main__":
    # Small shapes consistent with the module's MLP structure.
    B, OBS, ACT = 20, 32, 8
    HIDDEN = [32, 32, 32]
    INITIAL_STD = 1.0

    key = jax.random.PRNGKey(0)
    k_state, k_act, k_actor, k_critic = jax.random.split(key, 4)

    state = jax.random.normal(k_state, (B, OBS), dtype=jnp.float32)
    actions = jax.random.normal(k_act, (B, ACT), dtype=jnp.float32)
    log_std = jnp.full((1, ACT), math.log(INITIAL_STD), dtype=jnp.float32)

    actor_gains = [math.sqrt(2.0)] * len(HIDDEN) + [0.01]
    critic_gains = [math.sqrt(2.0)] * len(HIDDEN) + [1.0]
    actor_params = build_mlp_params(k_actor, [OBS] + HIDDEN + [ACT], actor_gains)
    critic_params = build_mlp_params(k_critic, [OBS] + HIDDEN + [1], critic_gains)

    # block_b=8 -> multi-step grid (3 steps) and exercises the batch-padding path.
    logp, ent, value, mean = jax.block_until_ready(
        actor_critic_evaluate(state, actions, log_std, actor_params, critic_params,
                              block_b=8)
    )

    # sanity check against pure-JAX reference
    r_logp, r_ent, r_value, r_mean = _ref_evaluate(
        state, actions, log_std, actor_params, critic_params)
    np.testing.assert_allclose(np.asarray(mean), np.asarray(r_mean), rtol=1e-4, atol=1e-5)
    np.testing.assert_allclose(np.asarray(value), np.asarray(r_value), rtol=1e-4, atol=1e-5)
    np.testing.assert_allclose(np.asarray(logp), np.asarray(r_logp), rtol=1e-4, atol=1e-5)
    np.testing.assert_allclose(np.asarray(ent), np.asarray(r_ent), rtol=1e-4, atol=1e-5)

    # TODO(synk): act()'s stochastic action sampling (torch.distributions .sample())
    # is not implemented; the deterministic evaluate() path is fused here.
    print("KERNEL_OK")
</pallas_src>

<mosaic_0001>
module attributes {stable_mosaic.version = 11 : i64} {
  func.func @kernel(%arg0: i32, %arg1: memref<8x32xf32, #tpu.memory_space<vmem>>, %arg2: memref<8x8xf32, #tpu.memory_space<vmem>>, %arg3: memref<1x8xf32, #tpu.memory_space<vmem>>, %arg4: memref<1x1xf32, #tpu.memory_space<vmem>>, %arg5: memref<32x64xf32, #tpu.memory_space<vmem>>, %arg6: memref<1x64xf32, #tpu.memory_space<vmem>>, %arg7: memref<64x64xf32, #tpu.memory_space<vmem>>, %arg8: memref<1x64xf32, #tpu.memory_space<vmem>>, %arg9: memref<64x64xf32, #tpu.memory_space<vmem>>, %arg10: memref<1x64xf32, #tpu.memory_space<vmem>>, %arg11: memref<64x128xf32, #tpu.memory_space<vmem>>, %arg12: memref<1x128xf32, #tpu.memory_space<vmem>>, %arg13: memref<8x128xf32, #tpu.memory_space<vmem>>) attributes {dimension_semantics = [#tpu.dimension_semantics<parallel>], iteration_bounds = array<i64: 3>, scalar_prefetch = 0 : i64, scratch_operands = 0 : i64, tpu.core_type = #tpu.core_type<tc>, window_params = [{transform_indices = @transform_0, window_bounds = array<i64: 8, 32>}, {transform_indices = @transform_1, window_bounds = array<i64: 8, 8>}, {pipeline_mode = #tpu.pipeline_mode<synchronous>, transform_indices = @transform_2, window_bounds = array<i64: 1, 8>}, {pipeline_mode = #tpu.pipeline_mode<synchronous>, transform_indices = @transform_3, window_bounds = array<i64: 1, 1>}, {pipeline_mode = #tpu.pipeline_mode<synchronous>, transform_indices = @transform_4, window_bounds = array<i64: 32, 64>}, {pipeline_mode = #tpu.pipeline_mode<synchronous>, transform_indices = @transform_5, window_bounds = array<i64: 1, 64>}, {pipeline_mode = #tpu.pipeline_mode<synchronous>, transform_indices = @transform_6, window_bounds = array<i64: 64, 64>}, {pipeline_mode = #tpu.pipeline_mode<synchronous>, transform_indices = @transform_7, window_bounds = array<i64: 1, 64>}, {pipeline_mode = #tpu.pipeline_mode<synchronous>, transform_indices = @transform_8, window_bounds = array<i64: 64, 64>}, {pipeline_mode = #tpu.pipeline_mode<synchronous>, transform_indices = @transform_9, window_bounds = array<i64: 1, 64>}, {pipeline_mode = #tpu.pipeline_mode<synchronous>, transform_indices = @transform_10, window_bounds = array<i64: 64, 128>}, {pipeline_mode = #tpu.pipeline_mode<synchronous>, transform_indices = @transform_11, window_bounds = array<i64: 1, 128>}, {transform_indices = @transform_12, window_bounds = array<i64: 8, 128>}]} {
    %c0 = arith.constant 0 : index
    %c0_0 = arith.constant 0 : index
    %0 = vector.load %arg1[%c0, %c0_0] : memref<8x32xf32, #tpu.memory_space<vmem>>, vector<8x32xf32>
    %c0_1 = arith.constant 0 : index
    %c0_2 = arith.constant 0 : index
    %1 = vector.load %arg5[%c0_1, %c0_2] : memref<32x64xf32, #tpu.memory_space<vmem>>, vector<32x64xf32>
    %cst = arith.constant dense<0.000000e+00> : vector<8x64xf32>
    %2 = tpu.matmul %0, %1, %cst {dimension_numbers = #tpu.dot_dimension_numbers<[1], [0], [0], [1], [0, 0, 1, 1], [], []>} : vector<8x32xf32>, vector<32x64xf32>, vector<8x64xf32> -> vector<8x64xf32>
    %c0_3 = arith.constant 0 : index
    %c0_4 = arith.constant 0 : index
    %3 = vector.load %arg6[%c0_3, %c0_4] : memref<1x64xf32, #tpu.memory_space<vmem>>, vector<1x64xf32>
    %4 = vector.broadcast %3 : vector<1x64xf32> to vector<8x64xf32>
    %5 = arith.addf %2, %4 : vector<8x64xf32>
    %cst_5 = arith.constant 0.000000e+00 : f32
    %6 = vector.broadcast %cst_5 : f32 to vector<8x64xf32>
    %7 = arith.cmpf ogt, %5, %6 : vector<8x64xf32>
    %8 = math.exp %5 : vector<8x64xf32>
    %cst_6 = arith.constant 1.000000e+00 : f32
    %9 = vector.broadcast %cst_6 : f32 to vector<8x64xf32>
    %10 = arith.subf %8, %9 : vector<8x64xf32>
    %cst_7 = arith.constant 1.67326319 : f32
    %11 = vector.broadcast %cst_7 : f32 to vector<8x64xf32>
    %12 = arith.mulf %11, %10 : vector<8x64xf32>
    %13 = arith.select %7, %5, %12 : vector<8x64xi1>, vector<8x64xf32>
    %cst_8 = arith.constant 1.05070102 : f32
    %14 = vector.broadcast %cst_8 : f32 to vector<8x64xf32>
    %15 = arith.mulf %14, %13 : vector<8x64xf32>
    %c0_9 = arith.constant 0 : index
    %c0_10 = arith.constant 0 : index
    %16 = vector.load %arg7[%c0_9, %c0_10] : memref<64x64xf32, #tpu.memory_space<vmem>>, vector<64x64xf32>
    %cst_11 = arith.constant dense<0.000000e+00> : vector<8x64xf32>
    %17 = tpu.matmul %15, %16, %cst_11 {dimension_numbers = #tpu.dot_dimension_numbers<[1], [0], [0], [1], [0, 0, 1, 1], [], []>} : vector<8x64xf32>, vector<64x64xf32>, vector<8x64xf32> -> vector<8x64xf32>
    %c0_12 = arith.constant 0 : index
    %c0_13 = arith.constant 0 : index
    %18 = vector.load %arg8[%c0_12, %c0_13] : memref<1x64xf32, #tpu.memory_space<vmem>>, vector<1x64xf32>
    %19 = vector.broadcast %18 : vector<1x64xf32> to vector<8x64xf32>
    %20 = arith.addf %17, %19 : vector<8x64xf32>
    %cst_14 = arith.constant 0.000000e+00 : f32
    %21 = vector.broadcast %cst_14 : f32 to vector<8x64xf32>
    %22 = arith.cmpf ogt, %20, %21 : vector<8x64xf32>
    %23 = math.exp %20 : vector<8x64xf32>
    %cst_15 = arith.constant 1.000000e+00 : f32
    %24 = vector.broadcast %cst_15 : f32 to vector<8x64xf32>
    %25 = arith.subf %23, %24 : vector<8x64xf32>
    %cst_16 = arith.constant 1.67326319 : f32
    %26 = vector.broadcast %cst_16 : f32 to vector<8x64xf32>
    %27 = arith.mulf %26, %25 : vector<8x64xf32>
    %28 = arith.select %22, %20, %27 : vector<8x64xi1>, vector<8x64xf32>
    %cst_17 = arith.constant 1.05070102 : f32
    %29 = vector.broadcast %cst_17 : f32 to vector<8x64xf32>
    %30 = arith.mulf %29, %28 : vector<8x64xf32>
    %c0_18 = arith.constant 0 : index
    %c0_19 = arith.constant 0 : index
    %31 = vector.load %arg9[%c0_18, %c0_19] : memref<64x64xf32, #tpu.memory_space<vmem>>, vector<64x64xf32>
    %cst_20 = arith.constant dense<0.000000e+00> : vector<8x64xf32>
    %32 = tpu.matmul %30, %31, %cst_20 {dimension_numbers = #tpu.dot_dimension_numbers<[1], [0], [0], [1], [0, 0, 1, 1], [], []>} : vector<8x64xf32>, vector<64x64xf32>, vector<8x64xf32> -> vector<8x64xf32>
    %c0_21 = arith.constant 0 : index
    %c0_22 = arith.constant 0 : index
    %33 = vector.load %arg10[%c0_21, %c0_22] : memref<1x64xf32, #tpu.memory_space<vmem>>, vector<1x64xf32>
    %34 = vector.broadcast %33 : vector<1x64xf32> to vector<8x64xf32>
    %35 = arith.addf %32, %34 : vector<8x64xf32>
    %cst_23 = arith.constant 0.000000e+00 : f32
    %36 = vector.broadcast %cst_23 : f32 to vector<8x64xf32>
    %37 = arith.cmpf ogt, %35, %36 : vector<8x64xf32>
    %38 = math.exp %35 : vector<8x64xf32>
    %cst_24 = arith.constant 1.000000e+00 : f32
    %39 = vector.broadcast %cst_24 : f32 to vector<8x64xf32>
    %40 = arith.subf %38, %39 : vector<8x64xf32>
    %cst_25 = arith.constant 1.67326319 : f32
    %41 = vector.broadcast %cst_25 : f32 to vector<8x64xf32>
    %42 = arith.mulf %41, %40 : vector<8x64xf32>
    %43 = arith.select %37, %35, %42 : vector<8x64xi1>, vector<8x64xf32>
    %cst_26 = arith.constant 1.05070102 : f32
    %44 = vector.broadcast %cst_26 : f32 to vector<8x64xf32>
    %45 = arith.mulf %44, %43 : vector<8x64xf32>
    %c0_27 = arith.constant 0 : index
    %c0_28 = arith.constant 0 : index
    %46 = vector.load %arg11[%c0_27, %c0_28] : memref<64x128xf32, #tpu.memory_space<vmem>>, vector<64x128xf32>
    %cst_29 = arith.constant dense<0.000000e+00> : vector<8x128xf32>
    %47 = tpu.matmul %45, %46, %cst_29 {dimension_numbers = #tpu.dot_dimension_numbers<[1], [0], [0], [1], [0, 0, 1, 1], [], []>} : vector<8x64xf32>, vector<64x128xf32>, vector<8x128xf32> -> vector<8x128xf32>
    %c0_30 = arith.constant 0 : index
    %c0_31 = arith.constant 0 : index
    %48 = vector.load %arg12[%c0_30, %c0_31] : memref<1x128xf32, #tpu.memory_space<vmem>>, vector<1x128xf32>
    %49 = vector.broadcast %48 : vector<1x128xf32> to vector<8x128xf32>
    %50 = arith.addf %47, %49 : vector<8x128xf32>
    %51 = vector.extract_strided_slice %50 {offsets = [0, 0], sizes = [8, 8], strides = [1, 1]} : vector<8x128xf32> to vector<8x8xf32>
    %c0_32 = arith.constant 0 : index
    %c0_33 = arith.constant 0 : index
    %52 = vector.load %arg2[%c0_32, %c0_33] : memref<8x8xf32, #tpu.memory_space<vmem>>, vector<8x8xf32>
    %53 = arith.subf %52, %51 : vector<8x8xf32>
    %c0_34 = arith.constant 0 : index
    %c0_35 = arith.constant 0 : index
    %54 = vector.load %arg3[%c0_34, %c0_35] : memref<1x8xf32, #tpu.memory_space<vmem>>, vector<1x8xf32>
    %55 = vector.broadcast %54 : vector<1x8xf32> to vector<8x8xf32>
    %56 = arith.mulf %53, %55 : vector<8x8xf32>
    %57 = arith.mulf %56, %56 : vector<8x8xf32>
    %cst_36 = arith.constant dense<0.000000e+00> : vector<8xf32>
    %58 = vector.multi_reduction <add>, %57, %cst_36 [1] : vector<8x8xf32> to vector<8xf32>
    %59 = vector.shape_cast %58 : vector<8xf32> to vector<8x1xf32>
    %cst_37 = arith.constant -5.000000e-01 : f32
    %60 = vector.broadcast %cst_37 : f32 to vector<8x1xf32>
    %61 = arith.mulf %60, %59 : vector<8x1xf32>
    %c0_38 = arith.constant 0 : index
    %c0_39 = arith.constant 0 : index
    %62 = vector.load %arg4[%c0_38, %c0_39] : memref<1x1xf32, #tpu.memory_space<vmem>>, vector<1x1xf32>
    %63 = vector.broadcast %62 : vector<1x1xf32> to vector<8x1xf32>
    %64 = arith.addf %61, %63 : vector<8x1xf32>
    %65 = tpu.iota {dimensions = array<i32: 1>} : vector<8x128xi32>
    %c9_i32 = arith.constant 9 : i32
    %66 = vector.broadcast %c9_i32 : i32 to vector<8x128xi32>
    %67 = arith.cmpi eq, %65, %66 : vector<8x128xi32>
    %68 = vector.shape_cast %64 : vector<8x1xf32> to vector<8x1xf32>
    %69 = vector.broadcast %68 : vector<8x1xf32> to vector<8x128xf32>
    %70 = arith.select %67, %69, %50 : vector<8x128xi1>, vector<8x128xf32>
    %c0_40 = arith.constant 0 : index
    %c0_41 = arith.constant 0 : index
    %71 = vector.load %arg13[%c0_40, %c0_41] : memref<8x128xf32, #tpu.memory_space<vmem>>, vector<8x128xf32>
    tpu.vector_store %arg13[%c0_40, %c0_41], %70 {strides = array<i32>} : memref<8x128xf32, #tpu.memory_space<vmem>>, vector<8x128xf32>,
    return
  }
  func.func @transform_0(%arg0: i32) -> (i32, i32) {
    %c0_i32 = arith.constant 0 : i32
    %c0_i32_0 = arith.constant 0 : i32
    return %arg0, %c0_i32 : i32, i32
  }
  func.func @transform_1(%arg0: i32) -> (i32, i32) {
    %c0_i32 = arith.constant 0 : i32
    %c0_i32_0 = arith.constant 0 : i32
    return %arg0, %c0_i32 : i32, i32
  }
  func.func @transform_2(%arg0: i32) -> (i32, i32) {
    %c0_i32 = arith.constant 0 : i32
    %c0_i32_0 = arith.constant 0 : i32
    %c0_i32_1 = arith.constant 0 : i32
    return %c0_i32, %c0_i32_0 : i32, i32
  }
  func.func @transform_3(%arg0: i32) -> (i32, i32) {
    %c0_i32 = arith.constant 0 : i32
    %c0_i32_0 = arith.constant 0 : i32
    %c0_i32_1 = arith.constant 0 : i32
    return %c0_i32, %c0_i32_0 : i32, i32
  }
  func.func @transform_4(%arg0: i32) -> (i32, i32) {
    %c0_i32 = arith.constant 0 : i32
    %c0_i32_0 = arith.constant 0 : i32
    %c0_i32_1 = arith.constant 0 : i32
    return %c0_i32, %c0_i32_0 : i32, i32
  }
  func.func @transform_5(%arg0: i32) -> (i32, i32) {
    %c0_i32 = arith.constant 0 : i32
    %c0_i32_0 = arith.constant 0 : i32
    %c0_i32_1 = arith.constant 0 : i32
    return %c0_i32, %c0_i32_0 : i32, i32
  }
  func.func @transform_6(%arg0: i32) -> (i32, i32) {
    %c0_i32 = arith.constant 0 : i32
    %c0_i32_0 = arith.constant 0 : i32
    %c0_i32_1 = arith.constant 0 : i32
    return %c0_i32, %c0_i32_0 : i32, i32
  }
  func.func @transform_7(%arg0: i32) -> (i32, i32) {
    %c0_i32 = arith.constant 0 : i32
    %c0_i32_0 = arith.constant 0 : i32
    %c0_i32_1 = arith.constant 0 : i32
    return %c0_i32, %c0_i32_0 : i32, i32
  }
  func.func @transform_8(%arg0: i32) -> (i32, i32) {
    %c0_i32 = arith.constant 0 : i32
    %c0_i32_0 = arith.constant 0 : i32
    %c0_i32_1 = arith.constant 0 : i32
    return %c0_i32, %c0_i32_0 : i32, i32
  }
  func.func @transform_9(%arg0: i32) -> (i32, i32) {
    %c0_i32 = arith.constant 0 : i32
    %c0_i32_0 = arith.constant 0 : i32
    %c0_i32_1 = arith.constant 0 : i32
    return %c0_i32, %c0_i32_0 : i32, i32
  }
  func.func @transform_10(%arg0: i32) -> (i32, i32) {
    %c0_i32 = arith.constant 0 : i32
    %c0_i32_0 = arith.constant 0 : i32
    %c0_i32_1 = arith.constant 0 : i32
    return %c0_i32, %c0_i32_0 : i32, i32
  }
  func.func @transform_11(%arg0: i32) -> (i32, i32) {
    %c0_i32 = arith.constant 0 : i32
    %c0_i32_0 = arith.constant 0 : i32
    %c0_i32_1 = arith.constant 0 : i32
    return %c0_i32, %c0_i32_0 : i32, i32
  }
  func.func @transform_12(%arg0: i32) -> (i32, i32) {
    %c0_i32 = arith.constant 0 : i32
    %c0_i32_0 = arith.constant 0 : i32
    return %arg0, %c0_i32 : i32, i32
  }
}

</mosaic_0001>

<bundles_post_ra>
// kernel: tpu_custom_call.1
= control target key start
LH: loop header
LB: loop body
LE: loop exit
PB: predicated region body
PF: predicated region fallthrough
CT: control target
= control target key end

     0   :  { %s1397_s0 = inlined_call_operand.hbm [shape: f32[24,32], index: 0, kind: input, shape index: {}]   ;;  %s1398_s1 = inlined_call_operand.vmem [shape: f32[24,8], index: 1, kind: input, shape index: {}]   ;;  %s1399_s2 = inlined_call_operand.vmem [shape: f32[1,8], index: 2, kind: input, shape index: {}]   ;;  %s1400_s3 = inlined_call_operand.<no memory space> [shape: f32[1,1], index: 3, kind: input, shape index: {}]   ;;  %s1401_s4 = inlined_call_operand.vmem [shape: f32[32,64], index: 4, kind: input, shape index: {}]   ;;  %s1402_s5 = inlined_call_operand.vmem [shape: f32[1,64], index: 5, kind: input, shape index: {}]   ;;  %s1403_s6 = inlined_call_operand.hbm [shape: f32[64,64], index: 6, kind: input, shape index: {}]   ;;  %s1404_s7 = inlined_call_operand.vmem [shape: f32[1,64], index: 7, kind: input, shape index: {}]   ;;  %s1405_s8 = inlined_call_operand.hbm [shape: f32[64,64], index: 8, kind: input, shape index: {}]   ;;  %s1406_s9 = inlined_call_operand.vmem [shape: f32[1,64], index: 9, kind: input, shape index: {}]   ;;  %s1407_s10 = inlined_call_operand.hbm [shape: f32[64,128], index: 10, kind: input, shape index: {}]   ;;  %s1408_s11 = inlined_call_operand.vmem [shape: f32[1,128], index: 11, kind: input, shape index: {}]   ;;  %s1409_s12 = inlined_call_operand.hbm [shape: f32[24,128], index: 12, kind: output, shape index: {}]  }
   0x1   :  { %1411 = sst [smem:[#allocation18_spill]] %s1403_s6  ;;  %v17_v0 = vstv %s1400_s3 }
   0x2   :  { %1412 = sst [smem:[#allocation19_spill]] %s1405_s8  ;;  %18 = vst [vmem:[#allocation2] sm:$0x1] %v17_v0 }
   0x3   :  { %1413 = sst [smem:[#allocation20_spill]] %s1407_s10 }
   0x4   :  { %19 = vsyncpa [#allocation4], 0 }
   0x5   :  { %21 = vsyncpa [#allocation4 + $0x1], 0 }
   0x6   :  { %22 = vsyncpa [#allocation7], 0 }
   0x7   :  { %23 = vsyncpa [#allocation10], 0 }
   0x8   :  { %24 = vsyncpa [#allocation5], 0 }
   0x9   :  { %26 = vsyncpa [#allocation5 + $0x1], 0  ;;  %s1204_s23 = smov 0   ;;  %s1206_s24 = smov 0  }
   0xa   :  { %s1208_s25 = smov 0   ;;  %s1210_s26 = smov 0  }
   0xb LB: > { %1414 = sst [smem:[#allocation16_spill]] %s1124_s25  ;;  %s1228_s29 = sadd.s32 4294967295, %s1128_s26   ;;  %s1128_s26 = sphi %s1210_s26, %s1429_s26   ;;  %s1124_s25 = sphi %s1208_s25, %s1426_s25   ;;  %s1120_s24 = sphi %s1206_s24, %s1428_s24   ;;  %s1116_s23 = sphi %s1204_s23, %s1427_s23  }
   0xc   : > { %s1415_s6 = sld [smem:[#allocation18_spill]]  ;;  %p816_p0 = scmp.ge.s32.totalorder %s1128_s26, 1 }
   0xd   : > { %p53_p1 = scmp.eq.s32.totalorder %s1228_s29, 0  ;;  %p325_p2 = scmp.lt.s32.totalorder %s1128_s26, 4 }
   0xe   : > { %s1130_s13 = smov [#allocation6]   ;;  %s1417_s8 = sld [smem:[#allocation19_spill]] }
   0xf   : > { %p1233_p3 = pnand %p816_p0, %p325_p2  ;;  %s350_s14 = sshll.u32 %s1130_s13, 4  ;;  %s351_s14 = int_to_ptr.vmem [resolvable:$true] %s350_s14 }
  0x10   : > { %s1419_s10 = sld [smem:[#allocation20_spill]]  ;;  %s1131_s22 = smov [#allocation8]  }
  0x11   : > { %p857_p4 = pneg %p1233_p3  ;;  %s367_s3 = sshll.u32 %s1131_s22, 4  ;;  %s368_s3 = int_to_ptr.vmem [resolvable:$true] %s367_s3 }
  0x12   : > { %s348_s28 = sshll.u32 %s1415_s6, 4  ;;  %s1132_s27 = smov 128   ;;  %s349_s28 = int_to_ptr.hbm [resolvable:$true] %s348_s28 }
  0x13   : > { %p1244_p5 = pnand %p857_p4, %p53_p1  ;;  %s1133_s13 = smov 8  }
  0x14   : > { %s365_s17 = sshll.u32 %s1417_s8, 4  ;;  %s1134_s15 = smov [#allocation9]   ;;  %s366_s17 = int_to_ptr.hbm [resolvable:$true] %s365_s17 }
  0x15   : > { %860 = dma.hbm_to_vmem [thread:$0]  (!%p1244_p5), %s349_s28, 1024, %s351_s14, [#allocation7], %s1132_s27, %s1132_s27, %s1133_s13  }
  0x16   : > { %s382_s21 = sshll.u32 %s1419_s10, 4  ;;  %s384_s16 = sshll.u32 %s1134_s15, 4  ;;  %s383_s21 = int_to_ptr.hbm [resolvable:$true] %s382_s21  ;;  %s385_s16 = int_to_ptr.vmem [resolvable:$true] %s384_s16 }
  0x17   : > { %863 = dma.hbm_to_vmem [thread:$0]  (!%p1244_p5), %s366_s17, 1024, %s368_s3, [#allocation7], %s1132_s27, %s1132_s27, %s1133_s13  }
  0x18   : > { %866 = dma.hbm_to_vmem [thread:$0]  (!%p1244_p5), %s383_s21, 1024, %s385_s16, [#allocation10], %s1132_s27, %s1132_s27, %s1133_s13  }
  0x19   : > { %s815_s19 = sadd.s32 4294967294, %s1128_s26   ;;  %s1259_s20 = sadd.s32 1, %s1128_s26  }
  0x1a   : > { %s39_s22 = sadd.s32 1, %s1124_s25  ;;  %s36_s28 = ssub.s32 %s1128_s26, %s1259_s20 }
  0x1b   : > { %p46_p6 = scmp.ne.s32.totalorder %s1124_s25, %s1120_s24  ;;  %p37_p7 = scmp.eq.s32.totalorder %s36_s28, 0 }
  0x1c   : > { %p47_p8 = scmp.eq.s32.totalorder %s1128_s26, 0  ;;  %p52_p9 = scmp.ne.s32.totalorder %s1120_s24, %s1116_s23 }
  0x1d   : > { %p312_p10 = scmp.eq.s32.totalorder %s1228_s29, 2  ;;  %p318_p13 = scmp.eq.s32.totalorder %s815_s19, 2 }
  0x1e   : > { %s1271_s14 = scalar_select %p37_p7, %s1124_s25, %s39_s22  }
  0x1f   : > { %p1275_p11 = por %p53_p1, %p52_p9  ;;  %p1279_p12 = por %p312_p10, %p46_p6 }
  0x20   : > { %1420 = sst [smem:[#allocation17_spill]] %s1271_s14  ;;  %p48_p0 = por %p47_p8, %p46_p6 }
  0x21   : > { %s401_s21 = sand.u32 1, %s1124_s25   ;;  %p1284_p2 = por %p318_p13, %p52_p9 }
  0x22   : > { %p878_p4 = scmp.lt.s32.totalorder %s1128_s26, 3  ;;  %s821_s27 = sshll.u32 %s401_s21, 3 }
  0x23   : > { %s822_s13 = sshll.u32 %s1128_s26, 3  ;;  %s405_s6 = scalar_lea.vmem [#allocation3], %s821_s27 }
  0x24   : > { %s409_s22 = scalar_lea.hbm %s1397_s0, %s822_s13  ;;  %s413_s8 = sshll.u32 %s405_s6, 4  ;;  %s414_s8 = int_to_ptr.vmem [resolvable:$true] %s413_s8 }
  0x25   : > { %s411_s28 = sshll.u32 %s409_s22, 4  ;;  %p1293_p5 = pnand %p878_p4, %p48_p0  ;;  %s412_s28 = int_to_ptr.hbm [resolvable:$true] %s411_s28 }
  0x26   : > { %s402_s10 = scalar_lea.sflag [#allocation4], %s401_s21  ;;  %s1024_s14 = sshra.s32 %s412_s28, 4  ;;  %s1025_s14 = int_to_ptr.hbm [resolvable:$true] %s1024_s14 }
  0x27   : > { %s1026_s25 = scalar_lea.hbm %s1025_s14, 8  ;;  %p1028_p7 = pneg %p1293_p5 }
  0x28   : > { %p1027_p6 = scmp.ne.s32.totalorder %s1025_s14, %s1026_s25  ;;  %s1031_s6 = scalar_lea.hbm %s1397_s0, 24 }
  0x29   : > { %p1032_p10 = scmp.lt.s32.totalorder %s1025_s14, %s1397_s0  ;;  %p1033_p13 = scmp.lt.s32.totalorder %s1031_s6, %s1026_s25 }
  0x2a   : > { %p1029_p8 = pnand %p1028_p7, %p1027_p6 }
  0x2b   : > { %p1034_p0 = por %p1033_p13, %p1032_p10 }
  0x2c   : > { %p1030_p9 = pneg %p1029_p8 }
  0x2e   : > { %p1035_p4 = pnand %p1034_p0, %p1030_p9 }
  0x30   : > { %1038 = shalt.err (!%p1035_p4)
}
  0x31   : > { %870 = dma.hbm_to_vmem [thread:$0]  (!%p1293_p5), %s412_s28, 128, %s414_s8, %s402_s10  }
  0x32   : > { %429 = sbr.rel (%p1233_p3) target bundleno = 886 (0x376), region = 68  ;;  %s1310_s21 = sand.u32 (!%p1233_p3), 1, %s1120_s24  }
  0x33   : > { %s824_s22 = sshll.u32 (!%p1233_p3), %s1310_s21, 3  ;;  %s432_s13 = scalar_lea.sflag (!%p1233_p3), [#allocation4], %s1310_s21 }
  0x34   : > { %s435_s25 = scalar_lea.vmem (!%p1233_p3), [#allocation3], %s824_s22 }
  0x37   : > { %1099 = dma.done.wait (%p1275_p11), %s432_s13, 128  }
  0x38   : > { %1101 = vsyncadd (%p1275_p11), %s432_s13, 4294967168 }
  0x39   : > { %1103 = dma.done.wait (%p53_p1), [#allocation7], 2048  }
  0x3a   : > { %1105 = vsyncadd (%p53_p1), [#allocation7], 4294965248 }
  0x3b   : > { %1107 = dma.done.wait (%p53_p1), [#allocation10], 1024  }
  0x3c   : > { %1109 = vsyncadd (%p53_p1), [#allocation10], 4294966272  ;;  %v504_v1 = vld [vmem:[%s1401_s4 + $0x18] sm:$0xff]  ;;  %v503_v2 = vld [vmem:[%s1401_s4 + $0x10] sm:$0xff]  ;;  %vm509_vm0 = vcmask 261120   ;;  %vm552_vm2 = vcmask 523264  }
  0x3d   : > { %525 = vmatpush.msra.mxu0 %v504_v1  ;;  %v502_v3 = vld [vmem:[%s1401_s4 + $0x8] sm:$0xff]  ;;  %v501_v4 = vld [vmem:[%s1401_s4] sm:$0xff]  ;;  %v544_v9 = vld [vmem:[#allocation6 + $0x20] sm:$0xff]  ;;  %p496_p1 = scmp.lt.s32.totalorder %s1228_s29, 2  ;;  %vm668_vm5 = vcmask 64512   ;;  %s838_s16 = sshll.u32 %s1228_s29, 3 }
  0x3e   : > { %v500_v5 = vld [vmem:[%s435_s25] sm:$0xff]  ;;  %v545_v8 = vld [vmem:[#allocation6 + $0x28] sm:$0xff]  ;;  %v540_v13 = vld [vmem:[#allocation6] sm:$0xff]  ;;  %s699_s8 = scalar_lea.hbm %s1409_s12, %s838_s16  ;;  %s689_s17 = scalar_lea.sflag [#allocation5], %s1310_s21 }
  0x3f   : > { %526 = vmatpush.msra.mxu0 %v503_v2  ;;  %v547_v6 = vld [vmem:[#allocation6 + $0x38] sm:$0xff]  ;;  %v546_v7 = vld [vmem:[#allocation6 + $0x30] sm:$0xff]  ;;  %v541_v12 = vld [vmem:[#allocation6 + $0x8] sm:$0xff]  ;;  %s497_s10 = scalar_select %p496_p1, %s1228_s29, 2  ;;  %v1135_v2 = vmov 0  }
  0x40   : > { %564 = vmatpush.msra.mxu1 %v547_v6  ;;  %v543_v10 = vld [vmem:[#allocation6 + $0x18] sm:$0xff]  ;;  %v542_v11 = vld [vmem:[#allocation6 + $0x10] sm:$0xff]  ;;  %v922_v14 = vld [vmem:[%s1402_s5] ss:$0 sm:$0xff]  ;;  %921 = vset.pattern.permute.xlu0 %v1135_v2  ;;  %s703_s14 = sshll.u32 %s699_s8, 4  ;;  %s704_s14 = int_to_ptr.hbm [resolvable:$true] %s703_s14 }
  0x41   : > { %527 = vmatpush.msra.mxu0 %v502_v3  ;;  %v590_v23 = vld [vmem:[#allocation8 + $0x38] sm:$0xff]  ;;  %v589_v24 = vld [vmem:[#allocation8 + $0x30] sm:$0xff]  ;;  %v588_v25 = vld [vmem:[#allocation8 + $0x28] sm:$0xff]  ;;  %s829_s30 = sshll.u32 %s497_s10, 3  ;;  %s495_s10 = scalar_lea.vmem [#allocation11], %s824_s22 }
  0x42   : > { %565 = vmatpush.msra.mxu1 %v546_v7  ;;  %606 = vmatpush.msra.mxu2 %v590_v23  ;;  %v587_v26 = vld [vmem:[#allocation8 + $0x20] sm:$0xff]  ;;  %v586_v27 = vld [vmem:[#allocation8 + $0x18] sm:$0xff]  ;;  %v585_v28 = vld [vmem:[#allocation8 + $0x10] sm:$0xff]  ;;  %s499_s28 = scalar_lea.vmem %s1398_s1, %s829_s30  ;;  %v678_v7 = vlaneseq  ;;  %s701_s30 = sshll.u32 %s495_s10, 4  ;;  %s702_s30 = int_to_ptr.vmem [resolvable:$true] %s701_s30 }
  0x43   : > { %528 = vmatpush.msra.mxu0 %v501_v4  ;;  %v584_v29 = vld [vmem:[#allocation8 + $0x8] sm:$0xff]  ;;  %v583_v30 = vld [vmem:[#allocation8] sm:$0xff]  ;;  %v632_v40 = vld [vmem:[#allocation9 + $0x38] sm:$0xff]  ;;  %s1074_s22 = scalar_lea.hbm %s1409_s12, 24 }
  0x44   : > { %830 = vmatmul.msk.f32.vlgmr.msra.gmra.mxu0 %vm509_vm0, %v500_v5  ;;  %566 = vmatpush.msra.mxu1 %v545_v8  ;;  %v923_v31 = vld [vmem:[%s1404_s7] ss:$0 sm:$0xff]  ;;  %v631_v41 = vld [vmem:[#allocation9 + $0x30] sm:$0xff]  ;;  %v629_v43 = vld [vmem:[#allocation9 + $0x20] sm:$0xff]  ;;  %v679_v8 = vand.u32 127, %v678_v7 }
  0x45   : > { %607 = vmatpush.msra.mxu2 %v589_v24  ;;  %648 = vmatpush.msra.mxu3 %v632_v40  ;;  %v630_v42 = vld [vmem:[#allocation9 + $0x28] sm:$0xff]  ;;  %v628_v44 = vld [vmem:[#allocation9 + $0x18] sm:$0xff]  ;;  %v627_v45 = vld [vmem:[#allocation9 + $0x10] sm:$0xff] }
  0x46   : > { %567 = vmatpush.msra.mxu1 %v544_v9  ;;  %v626_v46 = vld [vmem:[#allocation9 + $0x8] sm:$0xff]  ;;  %v625_v47 = vld [vmem:[#allocation9] sm:$0xff]  ;;  %vm680_vm6 = vcmp.eq.s32.totalorder %v679_v8, 9 }
  0x47   : > { %608 = vmatpush.msra.mxu2 %v588_v25  ;;  %649 = vmatpush.msra.mxu3 %v631_v41  ;;  %v924_v48 = vld [vmem:[%s1406_s9] ss:$0 sm:$0xff] }
  0x48   : > { %568 = vmatpush.msra.mxu1 %v543_v10  ;;  %v925_v57 = vld [vmem:[%s1408_s11] ss:$0 sm:$0xff] }
  0x49   : > { %609 = vmatpush.msra.mxu2 %v587_v26  ;;  %650 = vmatpush.msra.mxu3 %v630_v42  ;;  %v660_v59 = vld [vmem:[%s499_s28] sm:$0xff]  ;;  %s1068_s28 = sshra.s32 %s704_s14, 4  ;;  %s1069_s28 = int_to_ptr.hbm [resolvable:$true] %s1068_s28 }
  0x4a   : > { %569 = vmatpush.msra.mxu1 %v542_v11  ;;  %v926_v61 = vld [vmem:[%s1399_s2] ss:$0 sm:$0xff]  ;;  %s1070_s29 = scalar_lea.hbm %s1069_s28, 8  ;;  %p1075_p6 = scmp.lt.s32.totalorder %s1069_s28, %s1409_s12 }
  0x4b   : > { %610 = vmatpush.msra.mxu2 %v586_v27  ;;  %651 = vmatpush.msra.mxu3 %v629_v43  ;;  %v927_v3 = vld [vmem:[#allocation2] ss:$0 sm:$0xff]  ;;  %p1071_p3 = scmp.ne.s32.totalorder %s1069_s28, %s1070_s29  ;;  %p1076_p7 = scmp.lt.s32.totalorder %s1074_s22, %s1070_s29 }
  0x4c   : > { %570 = vmatpush.msra.mxu1 %v541_v12 }
  0x4d   : > { %611 = vmatpush.msra.mxu2 %v585_v28  ;;  %652 = vmatpush.msra.mxu3 %v628_v44  ;;  %p1072_p11 = pnand %p1071_p3, %p1279_p12  ;;  %p1077_p8 = por %p1076_p7, %p1075_p6 }
  0x4e   : > { %571 = vmatpush.msra.mxu1 %v540_v13 }
  0x4f   : > { %612 = vmatpush.msra.mxu2 %v584_v29  ;;  %653 = vmatpush.msra.mxu3 %v627_v45  ;;  %p1073_p5 = pneg %p1072_p11 }
  0x51   : > { %613 = vmatpush.msra.mxu2 %v583_v30  ;;  %654 = vmatpush.msra.mxu3 %v626_v46  ;;  %p1078_p9 = pnand %p1077_p8, %p1073_p5 }
  0x53   : > { %655 = vmatpush.msra.mxu3 %v625_v47 }
  0xc1   : > { %v530_v15 = vpop.f32.mrf.mxu0 }
  0xc2   : > { %v531_v16 = vadd.f32 %v922_v14, %v530_v15 }
  0xc4   : > { %v534_v17 = vmul.f32 1.442695, %v531_v16  ;;  %vm533_vm1 = vcmp.gt.f32.partialorder %v531_v16, 0.0 }
  0xc6   : > { %928 = vpow2.f32 %v534_v17 }
  0xcc   : > { %v929_v18 = vpop.eup %928 }
  0xcd   : > { %v831_v19 = vadd.f32 -1.0, %v929_v18 }
  0xcf   : > { %v537_v20 = vmul.f32 1.6732632, %v831_v19 }
  0xd1   : > { %v538_v21 = vsel %vm533_vm1, %v531_v16, %v537_v20 }
  0xd2   : > { %v539_v22 = vmul.f32 1.050701, %v538_v21 }
  0xd4   : > { %832 = vmatmul.msk.f32.vlgmr.msra.gmra.mxu1 %vm552_vm2, %v539_v22 }
 0x151   : > { %v573_v32 = vpop.f32.mrf.mxu1 }
 0x152   : > { %v574_v33 = vadd.f32 %v923_v31, %v573_v32 }
 0x154   : > { %v577_v34 = vmul.f32 1.442695, %v574_v33  ;;  %vm576_vm3 = vcmp.gt.f32.partialorder %v574_v33, 0.0 }
 0x156   : > { %930 = vpow2.f32 %v577_v34 }
 0x15c   : > { %v931_v35 = vpop.eup %930 }
 0x15d   : > { %v833_v36 = vadd.f32 -1.0, %v931_v35 }
 0x15f   : > { %v580_v37 = vmul.f32 1.6732632, %v833_v36 }
 0x161   : > { %v581_v38 = vsel %vm576_vm3, %v574_v33, %v580_v37 }
 0x162   : > { %v582_v39 = vmul.f32 1.050701, %v581_v38 }
 0x164   : > { %834 = vmatmul.msk.f32.vlgmr.msra.gmra.mxu2 %vm552_vm2, %v582_v39 }
 0x1e7   : > { %v615_v49 = vpop.f32.mrf.mxu2 }
 0x1e8   : > { %v616_v50 = vadd.f32 %v924_v48, %v615_v49 }
 0x1ea   : > { %v619_v51 = vmul.f32 1.442695, %v616_v50  ;;  %vm618_vm4 = vcmp.gt.f32.partialorder %v616_v50, 0.0 }
 0x1ec   : > { %932 = vpow2.f32 %v619_v51 }
 0x1f2   : > { %v933_v52 = vpop.eup %932 }
 0x1f3   : > { %v835_v53 = vadd.f32 -1.0, %v933_v52 }
 0x1f5   : > { %v622_v54 = vmul.f32 1.6732632, %v835_v53 }
 0x1f7   : > { %v623_v55 = vsel %vm618_vm4, %v616_v50, %v622_v54 }
 0x1f8   : > { %v624_v56 = vmul.f32 1.050701, %v623_v55 }
 0x1fa   : > { %836 = vmatmul.msk.f32.vlgmr.msra.gmra.mxu3 %vm552_vm2, %v624_v56 }
 0x27d   : > { %v657_v58 = vpop.f32.mrf.mxu3 }
 0x27e   : > { %v658_v60 = vadd.f32 %v925_v57, %v657_v58 }
 0x280   : > { %v661_v62 = vsub.f32 %v660_v59, %v658_v60 }
 0x282   : > { %v666_v63 = vmul.f32 %v926_v61, %v661_v62 }
 0x284   : > { %v667_v0 = vmul.f32 %v666_v63, %v666_v63 }
 0x286   : > { %v669_v1 = vsel %vm668_vm5, %v667_v0, 0.0 }
 0x287   : > { %670 = vadd.xlane.f32.xlu0 %v669_v1 }
 0x2fa   : > { %v671_v4 = vpop.xlane.xlu0 %670 }
 0x2fb   : > { %v672_v5 = vmul.f32 -0.5, %v671_v4 }
 0x2fd   : > { %v677_v6 = vadd.f32 %v927_v3, %v672_v5 }
 0x2ff   : > { %683 = vperm.xlu0 %921, %v677_v6  }
 0x371   : > { %v684_v9 = vpop.permute.xlu0 %683 }
 0x372   : > { %v686_v10 = vsel %vm680_vm6, %v684_v9, %v658_v60 }
 0x373   : > { %687 = vst [vmem:[%s495_s10] sm:$0xff] %v686_v10 }
 0x374   : > { %1081 = shalt.err (!%p1078_p9)
}
 0x375   : > { %855 = dma.vmem_to_hbm [thread:$0]  (%p1279_p12), %s702_s30, 128, %s704_s14, %s689_s17  }
 0x376 PF: > { %p882_p10 = scmp.ge.s32.totalorder %s1128_s26, 2  ;;  %s715_s21 = sand.u32 1, %s1116_s23  }
 0x377   : > { %s716_s16 = scalar_lea.sflag [#allocation5], %s715_s21 }
 0x378   : > { %p872_p13 = pnand %p882_p10, %p1284_p2 }
 0x37a   : > { %p873_p0 = pneg %p872_p13 }
 0x37c   : > { %1111 = dma.done.wait (%p873_p0), %s716_s16, 128  }
 0x37d   : > { %1113 = vsyncadd (%p873_p0), %s716_s16, 4294967168  ;;  %s1425_s13 = sld [smem:[#allocation16_spill]]  ;;  %p29_p4 = scmp.ge.s32.totalorder %s1259_s20, 5  }
 0x37e   : > { %s1426_s25 = sld [smem:[#allocation17_spill]]  ;;  %s1427_s23 = smov %s1120_s24 }
 0x37f   : > { %s1429_s26 = smov %s1259_s20  ;;  %31 = sbr.rel (!%p29_p4) target bundleno = 11 (0xb), region = 128 }
 0x383   : > { %s1428_s24 = smov %s1425_s13 }
 0x384   :  { %722 = vsyncpa [#allocation4], 1 }
 0x385   :  { %724 = vsyncpa [#allocation4 + $0x1], 1 }
 0x386   :  { %725 = vsyncpa [#allocation7], 1 }
 0x387   :  { %726 = vsyncpa [#allocation10], 1 }
 0x388   :  { %727 = vsyncpa [#allocation5], 1 }
 0x389   :  { %729 = vsyncpa [#allocation5 + $0x1], 1 }

</bundles_post_ra>
